<compile_context>
chip_gen: v6e
topology: v6e:2x2x1
jax: 0.10.0
libtpu: 0.0.40
codegen_flags: <defaults>
</compile_context>

<pallas_src>
import functools

import jax
import jax.numpy as jnp
from jax.experimental import pallas as pl
from jax.experimental.pallas import tpu as pltpu


def _cca_kernel(x_ref, w1_ref, b1_ref, w2t_ref, b2_ref, o_ref, *, inv_s):
    # x_ref: (Bt, C, Sp) f32 block (Sp possibly zero-padded past the true S).
    xb = x_ref[...]                                        # (Bt, C, Sp)

    # Single-pass per-channel statistics over the spatial (lane) axis.
    s1 = jnp.sum(xb, axis=-1)                              # (Bt, C)
    s2 = jnp.sum(xb * xb, axis=-1)                         # (Bt, C)
    mean = s1 * inv_s
    var = jnp.maximum(s2 * inv_s - mean * mean, 0.0)       # clamp: avoid NaN from cancellation
    y = jnp.sqrt(var) + mean                               # contrast + avg_pool, (Bt, C)

    # conv_du as VPU broadcast-multiply + lane/sublane reduces (skip the MXU:
    # these are N=1 matmuls with trivial FLOPs on the serial tail).
    w1 = w1_ref[...]                                       # (Cr, C)
    b1 = b1_ref[...]                                       # (1, Cr)
    w2t = w2t_ref[...]                                     # (Cr, C)
    b2 = b2_ref[...]                                       # (1, C)

    # h[b, r] = relu( sum_c w1[r, c] * y[b, c] + b1[r] )
    h = jnp.sum(y[:, None, :] * w1[None, :, :], axis=-1) + b1      # (Bt, Cr)
    h = jnp.maximum(h, 0.0)
    # z[b, c] = sum_r w2t[r, c] * h[b, r] + b2[c]
    z = jnp.sum(h[:, :, None] * w2t[None, :, :], axis=1) + b2      # (Bt, C)
    scale = jax.nn.sigmoid(z)                                      # (Bt, C)

    # x * y  (broadcast the per-(b, c) scale across the spatial lanes)
    o_ref[...] = xb * scale[:, :, None]


def _choose_bt(B, C, Sp, itemsize=4, pipeline_budget_bytes=16 * 1024 * 1024):
    """Largest batch-tile that (a) divides B, (b) keeps double-buffered in+out
    blocks within the pipeline budget, (c) leaves >= 2 grid steps when B >= 2
    so the v7x megacore can split the 'parallel' batch axis."""
    per_b = C * Sp * itemsize
    max_bt = max(1, pipeline_budget_bytes // (4 * per_b))   # 2x-buffered input + output
    if B >= 2:
        max_bt = min(max_bt, max(1, B // 2))
    bt = 1
    for d in range(1, B + 1):
        if B % d == 0 and d <= max_bt:
            bt = d
    return bt


def cca_layer(x, w1, b1, w2, b2):
    """x: (B, C, H, W) f32; w1: (Cr, C); b1: (Cr, 1); w2: (C, Cr); b2: (C, 1)."""
    B, C, H, W = x.shape
    Cr = w1.shape[0]
    S = H * W

    # Pad the spatial axis to a multiple of 128 (lane-dense, unmasked stores).
    Sp = ((S + 127) // 128) * 128
    x_flat = x.reshape(B, C, S)
    if Sp != S:
        x_flat = jnp.pad(x_flat, ((0, 0), (0, 0), (0, Sp - S)))

    # Lane-dense parameter layouts for the VPU path.
    b1_row = b1.reshape(1, Cr)
    b2_row = b2.reshape(1, C)
    w2t = w2.T                                              # (Cr, C)

    Bt = _choose_bt(B, C, Sp, itemsize=x.dtype.itemsize)
    grid = (B // Bt,)

    kernel = functools.partial(_cca_kernel, inv_s=1.0 / float(S))

    out_flat = pl.pallas_call(
        kernel,
        out_shape=jax.ShapeDtypeStruct((B, C, Sp), x.dtype),
        grid_spec=pltpu.PrefetchScalarGridSpec(
            num_scalar_prefetch=0,
            grid=grid,
            in_specs=[
                pl.BlockSpec((Bt, C, Sp), lambda b: (b, 0, 0)),
                pl.BlockSpec((Cr, C), lambda b: (0, 0)),
                pl.BlockSpec((1, Cr), lambda b: (0, 0)),
                pl.BlockSpec((Cr, C), lambda b: (0, 0)),
                pl.BlockSpec((1, C), lambda b: (0, 0)),
            ],
            out_specs=pl.BlockSpec((Bt, C, Sp), lambda b: (b, 0, 0)),
        ),
        compiler_params=pltpu.CompilerParams(
            dimension_semantics=("parallel",),
            # Explicit scoped-VMEM limit: safe on every generation
            # (v5e/v6e: 128 MiB physical, v7x: 64 MiB) and well above the
            # <=16 MiB block budget used by _choose_bt.
            vmem_limit_bytes=32 * 1024 * 1024,
        ),
    )(x_flat, w1, b1_row, w2t, b2_row)

    return out_flat[:, :, :S].reshape(B, C, H, W)


def cca_reference(x, w1, b1, w2, b2):
    """Plain-JAX reference mirroring the PyTorch forward."""
    mean = jnp.mean(x, axis=(2, 3), keepdims=True)                 # (B,C,1,1)
    var = jnp.mean((x - mean) ** 2, axis=(2, 3), keepdims=True)
    y = (jnp.sqrt(var) + mean)[:, :, 0, 0]                         # (B, C)
    h = jnp.maximum(y @ w1.T + b1[:, 0], 0.0)                      # (B, Cr)
    z = h @ w2.T + b2[:, 0]                                        # (B, C)
    s = jax.nn.sigmoid(z)
    return x * s[:, :, None, None]


if __name__ == "__main__":
    # Small shapes consistent with the module: channel=32, reduction=16 -> Cr=2
    B, C, H, W = 2, 32, 16, 16
    reduction = 16
    Cr = C // reduction

    key = jax.random.PRNGKey(0)
    kx, k1, k2, k3, k4 = jax.random.split(key, 5)

    x = jax.random.normal(kx, (B, C, H, W), dtype=jnp.float32)
    # Synthetic parameters with nn.Conv2d(C, Cr, 1)-style shapes.
    w1 = 0.1 * jax.random.normal(k1, (Cr, C), dtype=jnp.float32)
    b1 = 0.1 * jax.random.normal(k2, (Cr, 1), dtype=jnp.float32)
    w2 = 0.1 * jax.random.normal(k3, (C, Cr), dtype=jnp.float32)
    b2 = 0.1 * jax.random.normal(k4, (C, 1), dtype=jnp.float32)

    out = cca_layer(x, w1, b1, w2, b2)
    out = jax.block_until_ready(out)

    ref = cca_reference(x, w1, b1, w2, b2)
    assert out.shape == (B, C, H, W)
    assert jnp.allclose(out, ref, atol=1e-5, rtol=1e-5), "mismatch vs reference"

    print("KERNEL_OK")
</pallas_src>

<mosaic_0001>
module attributes {stable_mosaic.version = 11 : i64} {
  func.func @_cca_kernel(%arg0: i32, %arg1: memref<1x32x256xf32, #tpu.memory_space<vmem>>, %arg2: memref<2x32xf32, #tpu.memory_space<vmem>>, %arg3: memref<1x2xf32, #tpu.memory_space<vmem>>, %arg4: memref<2x32xf32, #tpu.memory_space<vmem>>, %arg5: memref<1x32xf32, #tpu.memory_space<vmem>>, %arg6: memref<1x32x256xf32, #tpu.memory_space<vmem>>) attributes {dimension_semantics = [#tpu.dimension_semantics<parallel>], iteration_bounds = array<i64: 2>, scalar_prefetch = 0 : i64, scratch_operands = 0 : i64, tpu.core_type = #tpu.core_type<tc>, window_params = [{transform_indices = @transform_0, window_bounds = array<i64: 1, 32, 256>}, {pipeline_mode = #tpu.pipeline_mode<synchronous>, transform_indices = @transform_1, window_bounds = array<i64: 2, 32>}, {pipeline_mode = #tpu.pipeline_mode<synchronous>, transform_indices = @transform_2, window_bounds = array<i64: 1, 2>}, {pipeline_mode = #tpu.pipeline_mode<synchronous>, transform_indices = @transform_3, window_bounds = array<i64: 2, 32>}, {pipeline_mode = #tpu.pipeline_mode<synchronous>, transform_indices = @transform_4, window_bounds = array<i64: 1, 32>}, {transform_indices = @transform_5, window_bounds = array<i64: 1, 32, 256>}]} {
    %c0 = arith.constant 0 : index
    %c0_0 = arith.constant 0 : index
    %c0_1 = arith.constant 0 : index
    %0 = vector.load %arg1[%c0, %c0_0, %c0_1] : memref<1x32x256xf32, #tpu.memory_space<vmem>>, vector<1x32x256xf32>
    %cst = arith.constant dense<0.000000e+00> : vector<1x32xf32>
    %1 = vector.multi_reduction <add>, %0, %cst [2] : vector<1x32x256xf32> to vector<1x32xf32>
    %2 = arith.mulf %0, %0 : vector<1x32x256xf32>
    %cst_2 = arith.constant dense<0.000000e+00> : vector<1x32xf32>
    %3 = vector.multi_reduction <add>, %2, %cst_2 [2] : vector<1x32x256xf32> to vector<1x32xf32>
    %cst_3 = arith.constant 3.906250e-03 : f32
    %4 = vector.broadcast %cst_3 : f32 to vector<1x32xf32>
    %5 = arith.mulf %1, %4 : vector<1x32xf32>
    %cst_4 = arith.constant 3.906250e-03 : f32
    %6 = vector.broadcast %cst_4 : f32 to vector<1x32xf32>
    %7 = arith.mulf %3, %6 : vector<1x32xf32>
    %8 = arith.mulf %5, %5 : vector<1x32xf32>
    %9 = arith.subf %7, %8 : vector<1x32xf32>
    %cst_5 = arith.constant 0.000000e+00 : f32
    %10 = vector.broadcast %cst_5 : f32 to vector<1x32xf32>
    %11 = arith.maximumf %9, %10 : vector<1x32xf32>
    %12 = math.sqrt %11 : vector<1x32xf32>
    %13 = arith.addf %12, %5 : vector<1x32xf32>
    %c0_6 = arith.constant 0 : index
    %c0_7 = arith.constant 0 : index
    %14 = vector.load %arg2[%c0_6, %c0_7] : memref<2x32xf32, #tpu.memory_space<vmem>>, vector<2x32xf32>
    %c0_8 = arith.constant 0 : index
    %c0_9 = arith.constant 0 : index
    %15 = vector.load %arg3[%c0_8, %c0_9] : memref<1x2xf32, #tpu.memory_space<vmem>>, vector<1x2xf32>
    %c0_10 = arith.constant 0 : index
    %c0_11 = arith.constant 0 : index
    %16 = vector.load %arg4[%c0_10, %c0_11] : memref<2x32xf32, #tpu.memory_space<vmem>>, vector<2x32xf32>
    %c0_12 = arith.constant 0 : index
    %c0_13 = arith.constant 0 : index
    %17 = vector.load %arg5[%c0_12, %c0_13] : memref<1x32xf32, #tpu.memory_space<vmem>>, vector<1x32xf32>
    %18 = vector.shape_cast %13 : vector<1x32xf32> to vector<1x1x32xf32>
    %19 = vector.shape_cast %14 : vector<2x32xf32> to vector<1x2x32xf32>
    %20 = vector.broadcast %18 : vector<1x1x32xf32> to vector<1x2x32xf32>
    %21 = arith.mulf %20, %19 : vector<1x2x32xf32>
    %cst_14 = arith.constant dense<0.000000e+00> : vector<1x2xf32>
    %22 = vector.multi_reduction <add>, %21, %cst_14 [2] : vector<1x2x32xf32> to vector<1x2xf32>
    %23 = arith.addf %22, %15 : vector<1x2xf32>
    %cst_15 = arith.constant 0.000000e+00 : f32
    %24 = vector.broadcast %cst_15 : f32 to vector<1x2xf32>
    %25 = arith.maximumf %23, %24 : vector<1x2xf32>
    %26 = vector.shape_cast %25 : vector<1x2xf32> to vector<1x2x1xf32>
    %27 = vector.shape_cast %16 : vector<2x32xf32> to vector<1x2x32xf32>
    %28 = vector.broadcast %26 : vector<1x2x1xf32> to vector<1x2x32xf32>
    %29 = arith.mulf %28, %27 : vector<1x2x32xf32>
    %cst_16 = arith.constant dense<0.000000e+00> : vector<1x32xf32>
    %30 = vector.multi_reduction <add>, %29, %cst_16 [1] : vector<1x2x32xf32> to vector<1x32xf32>
    %31 = arith.addf %30, %17 : vector<1x32xf32>
    %32 = arith.negf %31 : vector<1x32xf32>
    %33 = math.exp %32 : vector<1x32xf32>
    %cst_17 = arith.constant 1.000000e+00 : f32
    %34 = vector.broadcast %cst_17 : f32 to vector<1x32xf32>
    %35 = arith.addf %34, %33 : vector<1x32xf32>
    %36 = arith.divf %34, %35 : vector<1x32xf32>
    %37 = vector.shape_cast %36 : vector<1x32xf32> to vector<1x32x1xf32>
    %38 = vector.broadcast %37 : vector<1x32x1xf32> to vector<1x32x256xf32>
    %39 = arith.mulf %0, %38 : vector<1x32x256xf32>
    %c0_18 = arith.constant 0 : index
    %c0_19 = arith.constant 0 : index
    %c0_20 = arith.constant 0 : index
    %40 = vector.load %arg6[%c0_18, %c0_19, %c0_20] : memref<1x32x256xf32, #tpu.memory_space<vmem>>, vector<1x32x256xf32>
    tpu.vector_store %arg6[%c0_18, %c0_19, %c0_20], %39 {strides = array<i32>} : memref<1x32x256xf32, #tpu.memory_space<vmem>>, vector<1x32x256xf32>,
    return
  }
  func.func @transform_0(%arg0: i32) -> (i32, i32, i32) {
    %c0_i32 = arith.constant 0 : i32
    %c0_i32_0 = arith.constant 0 : i32
    %c0_i32_1 = arith.constant 0 : i32
    return %arg0, %c0_i32, %c0_i32_0 : i32, i32, i32
  }
  func.func @transform_1(%arg0: i32) -> (i32, i32) {
    %c0_i32 = arith.constant 0 : i32
    %c0_i32_0 = arith.constant 0 : i32
    %c0_i32_1 = arith.constant 0 : i32
    return %c0_i32, %c0_i32_0 : i32, i32
  }
  func.func @transform_2(%arg0: i32) -> (i32, i32) {
    %c0_i32 = arith.constant 0 : i32
    %c0_i32_0 = arith.constant 0 : i32
    %c0_i32_1 = arith.constant 0 : i32
    return %c0_i32, %c0_i32_0 : i32, i32
  }
  func.func @transform_3(%arg0: i32) -> (i32, i32) {
    %c0_i32 = arith.constant 0 : i32
    %c0_i32_0 = arith.constant 0 : i32
    %c0_i32_1 = arith.constant 0 : i32
    return %c0_i32, %c0_i32_0 : i32, i32
  }
  func.func @transform_4(%arg0: i32) -> (i32, i32) {
    %c0_i32 = arith.constant 0 : i32
    %c0_i32_0 = arith.constant 0 : i32
    %c0_i32_1 = arith.constant 0 : i32
    return %c0_i32, %c0_i32_0 : i32, i32
  }
  func.func @transform_5(%arg0: i32) -> (i32, i32, i32) {
    %c0_i32 = arith.constant 0 : i32
    %c0_i32_0 = arith.constant 0 : i32
    %c0_i32_1 = arith.constant 0 : i32
    return %arg0, %c0_i32, %c0_i32_0 : i32, i32, i32
  }
}

</mosaic_0001>

<bundles_post_ra>
// kernel: tpu_custom_call.1
= control target key start
LH: loop header
LB: loop body
LE: loop exit
PB: predicated region body
PF: predicated region fallthrough
CT: control target
= control target key end

     0   :  { %10 = vsyncpa [#allocation3], 0  ;;  %s1174_s0 = inlined_call_operand.hbm [shape: f32[2,32,256], index: 0, kind: input, shape index: {}]   ;;  %s1175_s1 = inlined_call_operand.hbm [shape: f32[2,32], index: 1, kind: input, shape index: {}]   ;;  %s1176_s2 = inlined_call_operand.vmem [shape: f32[1,2], index: 2, kind: input, shape index: {}]   ;;  %s1177_s3 = inlined_call_operand.vmem [shape: f32[2,32], index: 3, kind: input, shape index: {}]   ;;  %s1178_s4 = inlined_call_operand.vmem [shape: f32[1,32], index: 4, kind: input, shape index: {}]   ;;  %s1179_s5 = inlined_call_operand.hbm [shape: f32[2,32,256], index: 5, kind: output, shape index: {}]  }
   0x1   :  { %12 = vsyncpa [#allocation3 + $0x1], 0 }
   0x2   :  { %13 = vsyncpa [#allocation6], 0 }
   0x3   :  { %14 = vsyncpa [#allocation4], 0 }
   0x4   :  { %16 = vsyncpa [#allocation4 + $0x1], 0  ;;  %s913_s18 = smov 0   ;;  %s915_s19 = smov 0  }
   0x5   :  { %s917_s20 = smov 0   ;;  %s919_s21 = smov 0  }
   0x6 LB: > { %s934_s22 = sadd.s32 4294967295, %s873_s21   ;;  %s655_s23 = sadd.s32 4294967294, %s873_s21   ;;  %s873_s21 = sphi %s919_s21, %s1202_s21   ;;  %s869_s20 = sphi %s917_s20, %s1201_s20   ;;  %s865_s19 = sphi %s915_s19, %s1200_s19   ;;  %s861_s18 = sphi %s913_s18, %s1199_s18  }
   0x7   : > { %s938_s24 = sadd.s32 1, %s873_s21   ;;  %s29_s25 = sadd.s32 1, %s869_s20 }
   0x8   : > { %s26_s26 = ssub.s32 %s873_s21, %s938_s24  ;;  %p36_p0 = scmp.ne.s32.totalorder %s869_s20, %s865_s19 }
   0x9   : > { %p27_p1 = scmp.eq.s32.totalorder %s26_s26, 0  ;;  %p37_p2 = scmp.eq.s32.totalorder %s873_s21, 0 }
   0xa   : > { %p42_p3 = scmp.ne.s32.totalorder %s865_s19, %s861_s18  ;;  %p1180_p4 = scmp.eq.s32.totalorder %s934_s22, 0 }
   0xb   : > { %s950_s27 = scalar_select %p27_p1, %s869_s20, %s29_s25  }
   0xc   : > { %p952_p5 = por %p37_p2, %p36_p0  ;;  %p958_p6 = por %p1180_p4, %p42_p3 }
   0xd   : > { %p150_p7 = scmp.eq.s32.totalorder %s934_s22, 1  ;;  %p156_p8 = scmp.eq.s32.totalorder %s655_s23, 1 }
   0xe   : > { %s1185_s29 = scalar_select %p958_p6, 1, 0 }
   0xf   : > { %p656_p9 = scmp.ge.s32.totalorder %s873_s21, 1  ;;  %p163_p10 = scmp.lt.s32.totalorder %s873_s21, 3 }
  0x10   : > { %p965_p11 = por %p150_p7, %p36_p0  ;;  %p969_p12 = por %p156_p8, %p42_p3 }
  0x11   : > { %p973_p13 = pnand %p656_p9, %p163_p10  ;;  %s875_s8 = smov [#allocation5]  }
  0x12   : > { %s1186_s30 = scalar_select %p965_p11, 1, 0 }
  0x13   : > { %s1187_s6 = scalar_select %p969_p12, 1, 0 }
  0x14   : > { %s1188_s7 = scalar_select %p973_p13, 1, 0 }
  0x15   : > { %p683_p2 = pneg %p973_p13  ;;  %s176_s9 = sshll.u32 %s875_s8, 4  ;;  %s177_s9 = int_to_ptr.vmem [resolvable:$true] %s176_s9 }
  0x16   : > { %p696_p4 = scmp.lt.s32.totalorder %s873_s21, 2  ;;  %p1189_p0 = scmp.eq.s32.totalorder %s934_s22, 0 }
  0x17   : > { %s196_s11 = sand.u32 1, %s869_s20   ;;  %s762_s14 = scalar_lea.vmem %s177_s9, 32 }
  0x18   : > { %p983_p7 = pnand %p683_p2, %p1189_p0  ;;  %p990_p3 = pnand %p696_p4, %p952_p5 }
  0x19   : > { %s659_s13 = sshll.u32 %s196_s11, 6  ;;  %p763_p9 = scmp.ne.s32.totalorder %s177_s9, %s762_s14 }
  0x1a   : > { %p753_p8 = pneg %p983_p7  ;;  %p770_p12 = scmp.lt.s32.totalorder %s177_s9, %s177_s9 }
  0x1b   : > { %p771_p11 = scmp.lt.s32.totalorder %s762_s14, %s762_s14 }
  0x1c   : > { %p765_p10 = pnand %p763_p9, %p753_p8 }
  0x1d   : > { %p772_p2 = por %p771_p11, %p770_p12 }
  0x1e   : > { %p766_p1 = pneg %p765_p10 }
  0x20   : > { %p773_p0 = pnand %p772_p2, %p766_p1 }
  0x22   : > { %776 = shalt.err (!%p773_p0)
}
  0x23   : > { %686 = dma.hbm_to_vmem [thread:$0]  (!%p983_p7), %s1175_s1, 32, %s177_s9, [#allocation6]  }
  0x24   : > { %s673_s17 = sshll.u32 %s873_s21, 10  ;;  %s200_s23 = scalar_lea.vmem [#allocation2], %s659_s13 }
  0x25   : > { %s207_s25 = sshll.u32 %s200_s23, 4  ;;  %s1005_s8 = scalar_lea.hbm %s1174_s0, %s673_s17  ;;  %s1007_s25 = int_to_ptr.vmem [resolvable:$true] %s207_s25 }
  0x26   : > { %s1009_s10 = scalar_lea.sflag [#allocation3], %s196_s11  ;;  %s777_s14 = scalar_lea.hbm %s1005_s8, 1024 }
  0x27   : > { %p778_p4 = scmp.ne.s32.totalorder %s1005_s8, %s777_s14  ;;  %p779_p5 = pneg %p990_p3 }
  0x28   : > { %s782_s15 = scalar_lea.hbm %s1174_s0, 2048  ;;  %p783_p1 = scmp.lt.s32.totalorder %s1005_s8, %s1174_s0 }
  0x29   : > { %p780_p11 = pnand %p779_p5, %p778_p4  ;;  %p784_p7 = scmp.lt.s32.totalorder %s782_s15, %s777_s14 }
  0x2b   : > { %p781_p12 = pneg %p780_p11  ;;  %p785_p8 = por %p784_p7, %p783_p1 }
  0x2d   : > { %p786_p9 = pnand %p785_p8, %p781_p12 }
  0x2f   : > { %789 = shalt.err (!%p786_p9)
}
  0x30   : > { %s790_s11 = scalar_lea.vmem %s1007_s25, 1024  ;;  %s876_s23 = smov [#allocation2]  }
  0x31   : > { %p791_p10 = scmp.ne.s32.totalorder %s1007_s25, %s790_s11  ;;  %s795_s26 = sshll.u32 %s876_s23, 4  ;;  %s796_s26 = int_to_ptr.vmem [resolvable:$false] %s795_s26 }
  0x32   : > { %s797_s28 = scalar_lea.vmem %s796_s26, 2048  ;;  %p798_p4 = scmp.lt.s32.totalorder %s1007_s25, %s796_s26 }
  0x33   : > { %p793_p2 = pnand %p791_p10, %p779_p5  ;;  %p799_p11 = scmp.lt.s32.totalorder %s797_s28, %s790_s11 }
  0x35   : > { %p794_p0 = pneg %p793_p2  ;;  %p800_p6 = por %p799_p11, %p798_p4 }
  0x37   : > { %p801_p13 = pnand %p800_p6, %p794_p0 }
  0x39   : > { %804 = shalt.err (!%p801_p13)
}
  0x3a   : > { %s877_s14 = smov 256   ;;  %s878_s9 = smov 16  }
  0x3b   : > { %690 = dma.hbm_to_vmem [thread:$0]  (!%p990_p3), %s1005_s8, 1024, %s1007_s25, %s1009_s10, %s877_s14, %s877_s14, %s878_s9  }
  0x3c   : > { %p1192_p5 = scmp.ne.s32.totalorder %s1188_s7, 0 }
  0x3d   : > { %s1033_s13 = sand.u32 (!%p1192_p5), 1, %s865_s19   ;;  %p1193_p6 = scmp.ne.s32.totalorder (!%p1192_p5), %s1185_s29, 0 }
  0x3e   : > { %219 = sbr.rel (%p1192_p5) target bundleno = 850 (0x352), region = 40  ;;  %s663_s15 = sshll.u32 (!%p1192_p5), %s1033_s13, 6 }
  0x3f   : > { %s222_s16 = scalar_lea.sflag (!%p1192_p5), [#allocation3], %s1033_s13  ;;  %s225_s17 = scalar_lea.vmem (!%p1192_p5), [#allocation2], %s663_s15 }
  0x43   : > { %848 = dma.done.wait (%p1193_p6), %s222_s16, 1024  }
  0x44   : > { %850 = vsyncadd (%p1193_p6), %s222_s16, 4294966272  ;;  %p1194_p13 = scmp.eq.s32.totalorder %s934_s22, 0 }
  0x46   : > { %852 = dma.done.wait (%p1194_p13), [#allocation6], 32   ;;  %p1195_p3 = pmov %p1194_p13 }
  0x47   : > { %v1047_v0 = vld [vmem:[%s225_s17 + $0x20] sm:$0xff]  ;;  %v1049_v1 = vld [vmem:[%s225_s17 + $0x28] sm:$0xff]  ;;  %v1057_v5 = vld [vmem:[%s225_s17 + $0x30] sm:$0xff]  ;;  %v353_v24 = vlaneseq  ;;  %v879_v31 = vmov 0   ;;  %vm450_vm8 = vcmask 130112   ;;  %vm457_vm9 = vcmask 195712  }
  0x48   : > { %854 = vsyncadd (%p1195_p3), [#allocation6], 4294967264  ;;  %v1051_v2 = vld [vmem:[%s225_s17] sm:$0xff]  ;;  %v270_v3 = vadd.f32 %v1049_v1, %v1047_v0  ;;  %v1055_v4 = vld [vmem:[%s225_s17 + $0x8] sm:$0xff]  ;;  %v282_v17 = vmul.f32 %v1057_v5, %v1057_v5  ;;  %v280_v20 = vmul.f32 %v1047_v0, %v1047_v0  ;;  %v281_v21 = vmul.f32 %v1049_v1, %v1049_v1  ;;  %738 = vset.pattern.permute.xlu1 %v879_v31  ;;  %s255_s11 = scalar_lea.vmem [#allocation7], %s663_s15  ;;  %s674_s26 = sshll.u32 %s934_s22, 10 }
  0x49   : > { %v1059_v6 = vld [vmem:[%s225_s17 + $0x38] sm:$0xff]  ;;  %v264_v7 = vadd.f32 %v1055_v4, %v1051_v2  ;;  %v1063_v8 = vld [vmem:[%s225_s17 + $0x10] sm:$0xff]  ;;  %v276_v14 = vmul.f32 %v1051_v2, %v1051_v2  ;;  %v277_v15 = vmul.f32 %v1055_v4, %v1055_v4  ;;  %v1088_v25 = vshrl.u32 %v353_v24, 7  ;;  %v348_v27 = vld [vmem:[#allocation5] sm:$0x3]  ;;  %737 = vset.pattern.permute.xlu0 %v879_v31  ;;  %s572_s23 = sshll.u32 %s255_s11, 4  ;;  %s1129_s9 = scalar_lea.hbm %s1179_s5, %s674_s26  ;;  %s1124_s23 = int_to_ptr.vmem [resolvable:$true] %s572_s23 }
  0x4a   : > { %v1065_v9 = vld [vmem:[%s225_s17 + $0x18] sm:$0xff]  ;;  %271 = vadd.xlane.f32.xlu1 %v270_v3  ;;  %v273_v10 = vadd.f32 %v1059_v6, %v1057_v5  ;;  %v278_v11 = vmul.f32 %v1063_v8, %v1063_v8  ;;  %v283_v18 = vmul.f32 %v1059_v6, %v1059_v6  ;;  %v290_v23 = vadd.f32 %v281_v21, %v280_v20  ;;  %s559_s22 = scalar_lea.sflag [#allocation4], %s1033_s13  ;;  %s805_s15 = scalar_lea.vmem %s1124_s23, 1024 }
  0x4b   : > { %v279_v12 = vmul.f32 %v1065_v9, %v1065_v9  ;;  %265 = vadd.xlane.f32.xlu0 %v264_v7  ;;  %v267_v13 = vadd.f32 %v1065_v9, %v1063_v8  ;;  %v284_v19 = vadd.f32 %v277_v15, %v276_v14  ;;  %v355_v26 = vsub.s32 0, %v1088_v25  ;;  %p806_p12 = scmp.ne.s32.totalorder %s1124_s23, %s805_s15  ;;  %p1196_p1 = scmp.ne.s32.totalorder %s1186_s30, 0 }
  0x4c   : > { %v293_v22 = vadd.f32 %v283_v18, %v282_v17  ;;  %v374_v29 = vsub.s32 1, %v1088_v25  ;;  %vm464_vm10 = vcmask 261312   ;;  %vm485_vm11 = vcmask 1041409   ;;  %s880_s16 = smov [#allocation7]  }
  0x4d   : > { %v287_v16 = vadd.f32 %v279_v12, %v278_v11  ;;  %v356_v28 = vrot.slane %v348_v27, %v355_v26  ;;  %vm488_vm12 = vcmask 254976   ;;  %p807_p7 = pnand %p806_p12, %p1196_p1  ;;  %s809_s17 = sshll.u32 %s880_s16, 4  ;;  %s810_s17 = int_to_ptr.vmem [resolvable:$false] %s809_s17 }
  0x4e   : > { %274 = vadd.xlane.f32.xlu1 %v273_v10  ;;  %v375_v30 = vrot.slane %v348_v27, %v374_v29  ;;  %s811_s29 = scalar_lea.vmem %s810_s17, 2048  ;;  %p812_p9 = scmp.lt.s32.totalorder %s1124_s23, %s810_s17 }
  0x4f   : > { %268 = vadd.xlane.f32.xlu0 %v267_v13  ;;  %p808_p8 = pneg %p807_p7  ;;  %p813_p10 = scmp.lt.s32.totalorder %s811_s29, %s805_s15 }
  0x51   : > { %p814_p2 = por %p813_p10, %p812_p9 }
  0x52   : > { %288 = vadd.xlane.f32.xlu1 %v287_v16 }
  0x53   : > { %285 = vadd.xlane.f32.xlu0 %v284_v19  ;;  %p815_p0 = pnand %p814_p2, %p808_p8 }
  0x56   : > { %294 = vadd.xlane.f32.xlu1 %v293_v22 }
  0x57   : > { %291 = vadd.xlane.f32.xlu0 %v290_v23 }
  0x67   : > { %362 = vbcast.lane.b32.xlu1 %v356_v28, 264 }
  0x6b   : > { %377 = vbcast.lane.b32.xlu1 %v375_v30, 256 }
  0x6d   : > { %358 = vbcast.lane.b32.xlu0 %v356_v28, 256 }
  0x6f   : > { %381 = vbcast.lane.b32.xlu1 %v375_v30, 264 }
  0x71   : > { %366 = vbcast.lane.b32.xlu0 %v356_v28, 272 }
  0x73   : > { %385 = vbcast.lane.b32.xlu1 %v375_v30, 272 }
  0x75   : > { %370 = vbcast.lane.b32.xlu0 %v356_v28, 280 }
  0x77   : > { %389 = vbcast.lane.b32.xlu1 %v375_v30, 280 }
  0xd3   : > { %v272_v32 = vpop.xlane.xlu1 %271 }
  0xd4   : > { %v266_v33 = vpop.xlane.xlu0 %265  ;;  %v298_v43 = vmul.f32 0.00390625, %v272_v32 }
  0xd5   : > { %v296_v36 = vmul.f32 0.00390625, %v266_v33 }
  0xd6   : > { %v306_v53 = vmul.f32 %v298_v43, %v298_v43 }
  0xd7   : > { %v275_v34 = vpop.xlane.xlu1 %274  ;;  %v304_v44 = vmul.f32 %v296_v36, %v296_v36 }
  0xd8   : > { %v269_v35 = vpop.xlane.xlu0 %268  ;;  %v1094_v39 = vmul.f32 0.00390625, %v275_v34 }
  0xd9   : > { %v297_v37 = vmul.f32 0.00390625, %v269_v35 }
  0xda   : > { %v307_v49 = vmul.f32 %v1094_v39, %v1094_v39 }
  0xdb   : > { %v289_v38 = vpop.xlane.xlu1 %288  ;;  %v305_v40 = vmul.f32 %v297_v37, %v297_v37 }
  0xdc   : > { %v301_v41 = vmul.f32 0.00390625, %v289_v38  ;;  %v286_v42 = vpop.xlane.xlu0 %285 }
  0xdd   : > { %v300_v45 = vmul.f32 0.00390625, %v286_v42 }
  0xde   : > { %v309_v46 = vsub.f32 %v301_v41, %v305_v40 }
  0xdf   : > { %v308_v47 = vsub.f32 %v300_v45, %v304_v44  ;;  %v295_v48 = vpop.xlane.xlu1 %294 }
  0xe0   : > { %v313_v50 = vmax.f32 %v309_v46, 0.0  ;;  %v303_v51 = vmul.f32 0.00390625, %v295_v48  ;;  %v292_v52 = vpop.xlane.xlu0 %291 }
  0xe1   : > { %v312_v54 = vmax.f32 %v308_v47, 0.0  ;;  %v302_v55 = vmul.f32 0.00390625, %v292_v52 }
  0xe2   : > { %739 = vrsqrt.f32 %v313_v50  ;;  %v311_v56 = vsub.f32 %v303_v51, %v307_v49  ;;  %vm325_vm0 = vcmp.eq.f32.partialorder %v313_v50, inf  ;;  %v328_v7 = vand.u32 2147483648, %v313_v50 }
  0xe3   : > { %741 = vrsqrt.f32 %v312_v54  ;;  %v310_v57 = vsub.f32 %v302_v55, %v306_v53  ;;  %v363_v60 = vpop.permute.xlu1 %362  ;;  %vm327_vm1 = vcmp.eq.f32.partialorder %v313_v50, 0.0  ;;  %vm318_vm2 = vcmp.eq.f32.partialorder %v312_v54, inf }
  0xe4   : > { %v315_v58 = vmax.f32 %v311_v56, 0.0  ;;  %v321_v12 = vand.u32 2147483648, %v312_v54  ;;  %vm320_vm3 = vcmp.eq.f32.partialorder %v312_v54, 0.0  ;;  %v359_v16 = vpop.permute.xlu0 %358  ;;  %v440_v49 = vand.u32 127, %v353_v24 }
  0xe5   : > { %v314_v59 = vmax.f32 %v310_v57, 0.0 }
  0xe6   : > { %743 = vrsqrt.f32 %v315_v58  ;;  %vm339_vm6 = vcmp.eq.f32.partialorder %v315_v58, inf  ;;  %v342_v34 = vand.u32 2147483648, %v315_v58  ;;  %vm341_vm7 = vcmp.eq.f32.partialorder %v315_v58, 0.0 }
  0xe7   : > { %745 = vrsqrt.f32 %v314_v59  ;;  %v378_v61 = vpop.permute.xlu1 %377  ;;  %vm332_vm4 = vcmp.eq.f32.partialorder %v314_v59, inf  ;;  %v335_v28 = vand.u32 2147483648, %v314_v59  ;;  %vm334_vm5 = vcmp.eq.f32.partialorder %v314_v59, 0.0 }
  0xe8   : > { %v367_v33 = vpop.permute.xlu0 %366  ;;  %v445_v51 = vadd.s32 4294967288, %v440_v49  ;;  %v443_v55 = vsub.s32 %v440_v49, %v1088_v25  ;;  %v459_v57 = vadd.s32 4294967272, %v440_v49 }
  0xeb   : > { %v382_v20 = vpop.permute.xlu1 %381 }
  0xec   : > { %v371_v45 = vpop.permute.xlu0 %370 }
  0xef   : > { %v740_v62 = vpop.eup %739 }
  0xf0   : > { %v742_v63 = vpop.eup %741  ;;  %v324_v3 = vmul.f32 %v740_v62, %v313_v50 }
  0xf1   : > { %v317_v10 = vmul.f32 %v742_v63, %v312_v54  ;;  %v462_v63 = vsub.s32 %v459_v57, %v1088_v25 }
  0xf2   : > { %v326_v11 = vsel %vm325_vm0, %v313_v50, %v324_v3 }
  0xf3   : > { %v744_v13 = vpop.eup %743  ;;  %v329_v14 = vsel %vm327_vm1, %v328_v7, %v326_v11  ;;  %v319_v15 = vsel %vm318_vm2, %v312_v54, %v317_v10  ;;  %v448_v54 = vsub.s32 %v445_v51, %v1088_v25 }
  0xf4   : > { %v746_v17 = vpop.eup %745  ;;  %v345_v18 = vadd.f32 %v329_v14, %v297_v37  ;;  %v322_v19 = vsel %vm320_vm3, %v321_v12, %v319_v15  ;;  %v338_v21 = vmul.f32 %v744_v13, %v315_v58  ;;  %v386_v37 = vpop.permute.xlu1 %385 }
  0xf5   : > { %v344_v22 = vadd.f32 %v322_v19, %v296_v36  ;;  %v331_v23 = vmul.f32 %v746_v17, %v314_v59 }
  0xf6   : > { %v400_v27 = vmul.f32 %v363_v60, %v345_v18  ;;  %v340_v32 = vsel %vm339_vm6, %v315_v58, %v338_v21  ;;  %v404_v40 = vmul.f32 %v382_v20, %v345_v18 }
  0xf7   : > { %v399_v29 = vmul.f32 %v359_v16, %v344_v22  ;;  %v333_v30 = vsel %vm332_vm4, %v314_v59, %v331_v23  ;;  %v403_v35 = vmul.f32 %v378_v61, %v344_v22  ;;  %v343_v36 = vsel %vm341_vm7, %v342_v34, %v340_v32 }
  0xf8   : > { %v336_v31 = vsel %vm334_vm5, %v335_v28, %v333_v30  ;;  %419 = vperm.xlu1 %738, %v400_v27   ;;  %v347_v42 = vadd.f32 %v343_v36, %v1094_v39  ;;  %v390_v46 = vpop.permute.xlu1 %389  ;;  %v452_v39 = vadd.s32 4294967280, %v440_v49  ;;  %v350_v30 = vld [vmem:[%s1177_s3] sm:$0x3] }
  0xf9   : > { %416 = vperm.xlu0 %737, %v399_v29   ;;  %v346_v38 = vadd.f32 %v336_v31, %v298_v43  ;;  %v666_v43 = vld [vmem:[%s1176_s2] ss:$0 sm:$0xff] }
  0xfa   : > { %v402_v47 = vmul.f32 %v371_v45, %v347_v42  ;;  %v406_v48 = vmul.f32 %v390_v46, %v347_v42  ;;  %v455_v58 = vsub.s32 %v452_v39, %v1088_v25  ;;  %v351_v36 = vld [vmem:[%s1178_s4] sm:$0x1] }
  0xfb   : > { %v401_v41 = vmul.f32 %v367_v33, %v346_v38  ;;  %v405_v44 = vmul.f32 %v386_v37, %v346_v38 }
  0xfc   : > { %428 = vperm.xlu1 %738, %v403_v35  }
  0xfd   : > { %431 = vperm.xlu0 %737, %v404_v40  }
 0x100   : > { %422 = vperm.xlu1 %738, %v401_v41  }
 0x101   : > { %434 = vperm.xlu0 %737, %v405_v44  }
 0x104   : > { %425 = vperm.xlu1 %738, %v402_v47  }
 0x105   : > { %437 = vperm.xlu0 %737, %v406_v48  }
 0x109   : > { %498 = vbcast.lane.b32.xlu0 %v666_v43, 256 }
 0x173   : > { %v420_v50 = vpop.permute.xlu1 %419 }
 0x174   : > { %v417_v52 = vpop.permute.xlu0 %416  ;;  %v449_v60 = vrot.slane %v420_v50, %v448_v54 }
 0x175   : > { %v444_v61 = vrot.slane %v417_v52, %v443_v55 }
 0x177   : > { %v429_v53 = vpop.permute.xlu1 %428  ;;  %v451_v12 = vsel %vm450_vm8, %v449_v60, %v444_v61 }
 0x178   : > { %v432_v56 = vpop.permute.xlu0 %431  ;;  %v469_v24 = vrot.slane %v429_v53, %v443_v55 }
 0x179   : > { %v473_v3 = vrot.slane %v432_v56, %v448_v54 }
 0x17b   : > { %v423_v59 = vpop.permute.xlu1 %422  ;;  %v474_v15 = vsel %vm450_vm8, %v473_v3, %v469_v24 }
 0x17c   : > { %v435_v62 = vpop.permute.xlu0 %434  ;;  %v456_v7 = vrot.slane %v423_v59, %v455_v58 }
 0x17d   : > { %v478_v10 = vrot.slane %v435_v62, %v455_v58 }
 0x17e   : > { %v458_v16 = vsel %vm457_vm9, %v456_v7, %v451_v12 }
 0x17f   : > { %v426_v11 = vpop.permute.xlu1 %425  ;;  %v479_v18 = vsel %vm457_vm9, %v478_v10, %v474_v15 }
 0x180   : > { %v463_v13 = vrot.slane %v426_v11, %v462_v63  ;;  %v438_v14 = vpop.permute.xlu0 %437 }
 0x181   : > { %v483_v17 = vrot.slane %v438_v14, %v462_v63 }
 0x182   : > { %v465_v19 = vsel %vm464_vm10, %v463_v13, %v458_v16 }
 0x183   : > { %v484_v20 = vsel %vm464_vm10, %v483_v17, %v479_v18 }
 0x184   : > { %v486_v21 = vsel %vm485_vm11, %v484_v20, %v465_v19  ;;  %v499_v23 = vpop.permute.xlu0 %498 }
 0x185   : > { %v489_v22 = vsel %vm488_vm12, %v486_v21, 0.0 }
 0x186   : > { %490 = vadd.xlane.f32.xlu1 %v489_v22 }
 0x20f   : > { %v491_v27 = vpop.xlane.xlu1 %490 }
 0x210   : > { %v501_v28 = vadd.f32 %v499_v23, %v491_v27 }
 0x212   : > { %v502_v29 = vmax.f32 %v501_v28, 0.0 }
 0x214   : > { %505 = vperm.xlu0 %737, %v502_v29  }
 0x28f   : > { %v506_v31 = vpop.permute.xlu0 %505 }
 0x290   : > { %v508_v32 = vmul.f32 %v506_v31, %v350_v30 }
 0x292   : > { %v509_v33 = vsel %vm488_vm12, %v508_v32, 0.0 }
 0x293   : > { %v510_v34 = vrot.slane %v509_v33, 4 }
 0x295   : > { %v511_v35 = vadd.f32 %v510_v34, %v509_v33 }
 0x297   : > { %v512_v37 = vrot.slane %v511_v35, 2 }
 0x299   : > { %v513_v38 = vadd.f32 %v512_v37, %v511_v35 }
 0x29b   : > { %v514_v40 = vrot.slane %v513_v38, 1 }
 0x29d   : > { %v515_v41 = vadd.f32 %v514_v40, %v513_v38 }
 0x29f   : > { %v516_v42 = vadd.f32 %v515_v41, %v351_v36 }
 0x2a1   : > { %v667_v44 = vmul.f32 -1.442695, %v516_v42 }
 0x2a3   : > { %747 = vpow2.f32 %v667_v44 }
 0x2b0   : > { %v748_v45 = vpop.eup %747 }
 0x2b1   : > { %v520_v46 = vadd.f32 1.0, %v748_v45 }
 0x2b3   : > { %749 = vrcp.f32 %v520_v46 }
 0x2c0   : > { %v750_v47 = vpop.eup %749 }
 0x2c1   : > { %v526_v48 = vrot.slane %v750_v47, %v355_v26 }
 0x2c3   : > { %528 = vbcast.lane.b32.xlu0 %v526_v48, 256 }
 0x2c7   : > { %532 = vbcast.lane.b32.xlu0 %v526_v48, 264 }
 0x2cb   : > { %536 = vbcast.lane.b32.xlu0 %v526_v48, 272 }
 0x2cf   : > { %540 = vbcast.lane.b32.xlu0 %v526_v48, 280 }
 0x335   : > { %v529_v43 = vpop.permute.xlu0 %528 }
 0x336   : > { %v542_v49 = vmul.f32 %v529_v43, %v1051_v2  ;;  %v543_v50 = vmul.f32 %v529_v43, %v1055_v4 }
 0x338   : > { %550 = vst [vmem:[%s255_s11] sm:$0xff] %v542_v49  ;;  %551 = vst [vmem:[%s255_s11 + $0x8] sm:$0xff] %v543_v50 }
 0x339   : > { %v533_v51 = vpop.permute.xlu0 %532 }
 0x33a   : > { %v544_v52 = vmul.f32 %v533_v51, %v1063_v8  ;;  %v545_v25 = vmul.f32 %v533_v51, %v1065_v9 }
 0x33c   : > { %552 = vst [vmem:[%s255_s11 + $0x10] sm:$0xff] %v544_v52  ;;  %553 = vst [vmem:[%s255_s11 + $0x18] sm:$0xff] %v545_v25 }
 0x33d   : > { %v537_v26 = vpop.permute.xlu0 %536 }
 0x33e   : > { %v546_v39 = vmul.f32 %v537_v26, %v1047_v0  ;;  %v547_v2 = vmul.f32 %v537_v26, %v1049_v1 }
 0x340   : > { %554 = vst [vmem:[%s255_s11 + $0x20] sm:$0xff] %v546_v39  ;;  %555 = vst [vmem:[%s255_s11 + $0x28] sm:$0xff] %v547_v2 }
 0x341   : > { %v541_v4 = vpop.permute.xlu0 %540 }
 0x342   : > { %v548_v8 = vmul.f32 %v541_v4, %v1057_v5  ;;  %v549_v0 = vmul.f32 %v541_v4, %v1059_v6 }
 0x344   : > { %556 = vst [vmem:[%s255_s11 + $0x30] sm:$0xff] %v548_v8  ;;  %557 = vst [vmem:[%s255_s11 + $0x38] sm:$0xff] %v549_v0 }
 0x345   : > { %818 = shalt.err (!%p815_p0)
}
 0x346   : > { %s819_s7 = scalar_lea.hbm %s1129_s9, 1024  ;;  %s823_s8 = scalar_lea.hbm %s1179_s5, 2048 }
 0x347   : > { %p820_p4 = scmp.ne.s32.totalorder %s1129_s9, %s819_s7  ;;  %p824_p6 = scmp.lt.s32.totalorder %s1129_s9, %s1179_s5 }
 0x348   : > { %p825_p13 = scmp.lt.s32.totalorder %s823_s8, %s819_s7 }
 0x349   : > { %p821_p11 = pnand %p820_p4, %p1196_p1 }
 0x34a   : > { %p826_p3 = por %p825_p13, %p824_p6 }
 0x34b   : > { %p822_p5 = pneg %p821_p11 }
 0x34d   : > { %p827_p12 = pnand %p826_p3, %p822_p5 }
 0x34f   : > { %830 = shalt.err (!%p827_p12)
}
 0x350   : > { %s881_s26 = smov 256   ;;  %s882_s28 = smov 16  }
 0x351   : > { %681 = dma.vmem_to_hbm [thread:$0]  (%p1196_p1), %s1124_s23, 1024, %s1129_s9, %s559_s22, %s881_s26, %s881_s26, %s882_s28  }
 0x352 PF: > { %s587_s14 = sand.u32 1, %s861_s18   ;;  %p1197_p7 = scmp.ne.s32.totalorder %s1187_s6, 0 }
 0x353   : > { %p1198_p8 = scmp.ge.s32.totalorder %s873_s21, 2  ;;  %s588_s15 = scalar_lea.sflag [#allocation4], %s587_s14 }
 0x355   : > { %p692_p9 = pnand %p1198_p8, %p1197_p7 }
 0x357   : > { %p693_p10 = pneg %p692_p9 }
 0x359   : > { %856 = dma.done.wait (%p693_p10), %s588_s15, 1024  }
 0x35a   : > { %858 = vsyncadd (%p693_p10), %s588_s15, 4294966272  ;;  %p19_p2 = scmp.ge.s32.totalorder %s938_s24, 4   ;;  %s1199_s18 = smov %s865_s19 }
 0x35b   : > { %s1200_s19 = smov %s869_s20  ;;  %s1201_s20 = smov %s950_s27 }
 0x35c   : > { %s1202_s21 = smov %s938_s24  ;;  %21 = sbr.rel (!%p19_p2) target bundleno = 6 (0x6), region = 89 }
 0x361   :  { %593 = vsyncpa [#allocation3], 1 }
 0x362   :  { %595 = vsyncpa [#allocation3 + $0x1], 1 }
 0x363   :  { %596 = vsyncpa [#allocation6], 1 }
 0x364   :  { %597 = vsyncpa [#allocation4], 1 }
 0x365   :  { %599 = vsyncpa [#allocation4 + $0x1], 1 }

</bundles_post_ra>
